<compile_context>
chip_gen: v5e
topology: v5e:2x2
jax: 0.10.0
libtpu: 0.0.40
codegen_flags: <defaults>
</compile_context>

<pallas_src>
import jax
import jax.numpy as jnp
from jax.experimental import pallas as pl
from jax.experimental.pallas import tpu as pltpu


def fused_linear_kernel(x_ref, w_ref, b_ref, o_ref):
    """One batch tile: o = x @ W + b with W already = W1@W2, b = b1@W2 + b2."""
    x = x_ref[...]          # (TB, F)
    w = w_ref[...]          # (F, O_pad)  resident across batch steps
    b = b_ref[...]          # (1, O_pad)  resident across batch steps
    n_feat = w.shape[0]

    if n_feat <= 8:
        # Tiny contraction dim: VPU broadcast MACs (outer products), no MXU push/pop.
        acc = b + x[:, 0:1] * w[0:1, :]
        for f in range(1, n_feat):
            acc = acc + x[:, f:f + 1] * w[f:f + 1, :]
    else:
        # Fallback for larger feature dims: use the MXU with f32 accumulation.
        acc = b + jnp.dot(x, w, preferred_element_type=jnp.float32)

    o_ref[...] = acc.astype(o_ref.dtype)


def mlp_forward(x, w1, b1, w2, b2, *, tile_b=256):
    """x: (B, F) f32; w1: (F, H); b1: (1, H); w2: (H, O); b2: (1, O). Returns (B, O)."""
    B, F = x.shape
    O = w2.shape[1]

    # ---- host/XLA-side algebraic fusion of the two bias'd linears (exact: no nonlinearity)
    w = jnp.dot(w1, w2, preferred_element_type=jnp.float32)        # (F, O)
    b = jnp.dot(b1, w2, preferred_element_type=jnp.float32) + b2   # (1, O)

    # ---- pad output dim to a lane-dense multiple of 128 (unmasked vector stores)
    O_pad = pl.cdiv(O, 128) * 128
    w = jnp.pad(w, ((0, 0), (0, O_pad - O)))
    b = jnp.pad(b, ((0, 0), (0, O_pad - O)))

    # ---- pad batch to a multiple of the (8-aligned) batch tile
    tb = min(tile_b, pl.cdiv(B, 8) * 8)
    B_pad = pl.cdiv(B, tb) * tb
    x_pad = jnp.pad(x, ((0, B_pad - B), (0, 0)))

    out_pad = pl.pallas_call(
        fused_linear_kernel,
        out_shape=jax.ShapeDtypeStruct((B_pad, O_pad), jnp.float32),
        grid=(B_pad // tb,),
        in_specs=[
            pl.BlockSpec((tb, F), lambda i: (i, 0)),        # batch tile of x
            pl.BlockSpec((F, O_pad), lambda i: (0, 0)),     # fused weight, resident
            pl.BlockSpec((1, O_pad), lambda i: (0, 0)),     # fused bias, resident
        ],
        out_specs=pl.BlockSpec((tb, O_pad), lambda i: (i, 0)),
        compiler_params=pltpu.CompilerParams(
            dimension_semantics=("parallel",),              # shard batch across TCs (v7x)
        ),
    )(x_pad, w, b)

    return out_pad[:B, :O]


def init_params(key, n_feature, n_hidden, output_size):
    """Deterministic init mirroring nn.Linear's U(-1/sqrt(fan_in), 1/sqrt(fan_in))."""
    k1, k2, k3, k4 = jax.random.split(key, 4)
    lim1 = 1.0 / jnp.sqrt(jnp.float32(n_feature))
    lim2 = 1.0 / jnp.sqrt(jnp.float32(n_hidden))
    # Stored as (in, out): equivalent to torch weight (out, in) transposed.
    w1 = jax.random.uniform(k1, (n_feature, n_hidden), jnp.float32, -lim1, lim1)
    b1 = jax.random.uniform(k2, (1, n_hidden), jnp.float32, -lim1, lim1)
    w2 = jax.random.uniform(k3, (n_hidden, output_size), jnp.float32, -lim2, lim2)
    b2 = jax.random.uniform(k4, (1, output_size), jnp.float32, -lim2, lim2)
    return w1, b1, w2, b2


if __name__ == "__main__":
    # Matches the PyTorch script: train_size=100 cities, n_feature=2 (x,y coords),
    # n_hidden=32, output_size=num_nodes=3.
    batch = 100
    n_feature = 2
    n_hidden = 32
    output_size = 3

    key = jax.random.PRNGKey(0)
    kx, kp = jax.random.split(key)
    x = jax.random.uniform(kx, (batch, n_feature), jnp.float32)  # current_city coords
    w1, b1, w2, b2 = init_params(kp, n_feature, n_hidden, output_size)

    # Use a 64-row batch tile so the demo exercises a multi-step batch grid (+padding).
    probs = mlp_forward(x, w1, b1, w2, b2, tile_b=64)
    jax.block_until_ready(probs)

    # Reference check against plain JAX (same semantics as the torch forward; no softmax).
    ref = (x @ w1 + b1) @ w2 + b2
    assert probs.shape == (batch, output_size)
    assert jnp.allclose(probs, ref, atol=1e-5, rtol=1e-5)

    print("KERNEL_OK")
</pallas_src>

<mosaic_0001>
module attributes {stable_mosaic.version = 11 : i64} {
  func.func @fused_linear_kernel(%arg0: i32, %arg1: memref<64x2xf32, #tpu.memory_space<vmem>>, %arg2: memref<2x128xf32, #tpu.memory_space<vmem>>, %arg3: memref<1x128xf32, #tpu.memory_space<vmem>>, %arg4: memref<64x128xf32, #tpu.memory_space<vmem>>) attributes {dimension_semantics = [#tpu.dimension_semantics<parallel>], iteration_bounds = array<i64: 2>, scalar_prefetch = 0 : i64, scratch_operands = 0 : i64, tpu.core_type = #tpu.core_type<tc>, window_params = [{transform_indices = @transform_0, window_bounds = array<i64: 64, 2>}, {pipeline_mode = #tpu.pipeline_mode<synchronous>, transform_indices = @transform_1, window_bounds = array<i64: 2, 128>}, {pipeline_mode = #tpu.pipeline_mode<synchronous>, transform_indices = @transform_2, window_bounds = array<i64: 1, 128>}, {transform_indices = @transform_3, window_bounds = array<i64: 64, 128>}]} {
    %c0 = arith.constant 0 : index
    %c0_0 = arith.constant 0 : index
    %0 = vector.load %arg1[%c0, %c0_0] : memref<64x2xf32, #tpu.memory_space<vmem>>, vector<64x2xf32>
    %c0_1 = arith.constant 0 : index
    %c0_2 = arith.constant 0 : index
    %1 = vector.load %arg2[%c0_1, %c0_2] : memref<2x128xf32, #tpu.memory_space<vmem>>, vector<2x128xf32>
    %c0_3 = arith.constant 0 : index
    %c0_4 = arith.constant 0 : index
    %2 = vector.load %arg3[%c0_3, %c0_4] : memref<1x128xf32, #tpu.memory_space<vmem>>, vector<1x128xf32>
    %3 = vector.extract_strided_slice %0 {offsets = [0, 0], sizes = [64, 1], strides = [1, 1]} : vector<64x2xf32> to vector<64x1xf32>
    %4 = vector.extract_strided_slice %1 {offsets = [0, 0], sizes = [1, 128], strides = [1, 1]} : vector<2x128xf32> to vector<1x128xf32>
    %5 = vector.broadcast %3 : vector<64x1xf32> to vector<64x128xf32>
    %6 = vector.broadcast %4 : vector<1x128xf32> to vector<64x128xf32>
    %7 = arith.mulf %5, %6 : vector<64x128xf32>
    %8 = vector.broadcast %2 : vector<1x128xf32> to vector<64x128xf32>
    %9 = arith.addf %8, %7 : vector<64x128xf32>
    %10 = vector.extract_strided_slice %0 {offsets = [0, 1], sizes = [64, 1], strides = [1, 1]} : vector<64x2xf32> to vector<64x1xf32>
    %11 = vector.extract_strided_slice %1 {offsets = [1, 0], sizes = [1, 128], strides = [1, 1]} : vector<2x128xf32> to vector<1x128xf32>
    %12 = vector.broadcast %10 : vector<64x1xf32> to vector<64x128xf32>
    %13 = vector.broadcast %11 : vector<1x128xf32> to vector<64x128xf32>
    %14 = arith.mulf %12, %13 : vector<64x128xf32>
    %15 = arith.addf %9, %14 : vector<64x128xf32>
    %c0_5 = arith.constant 0 : index
    %c0_6 = arith.constant 0 : index
    %16 = vector.load %arg4[%c0_5, %c0_6] : memref<64x128xf32, #tpu.memory_space<vmem>>, vector<64x128xf32>
    tpu.vector_store %arg4[%c0_5, %c0_6], %15 {strides = array<i32>} : memref<64x128xf32, #tpu.memory_space<vmem>>, vector<64x128xf32>,
    return
  }
  func.func @transform_0(%arg0: i32) -> (i32, i32) {
    %c0_i32 = arith.constant 0 : i32
    %c0_i32_0 = arith.constant 0 : i32
    return %arg0, %c0_i32 : i32, i32
  }
  func.func @transform_1(%arg0: i32) -> (i32, i32) {
    %c0_i32 = arith.constant 0 : i32
    %c0_i32_0 = arith.constant 0 : i32
    %c0_i32_1 = arith.constant 0 : i32
    return %c0_i32, %c0_i32_0 : i32, i32
  }
  func.func @transform_2(%arg0: i32) -> (i32, i32) {
    %c0_i32 = arith.constant 0 : i32
    %c0_i32_0 = arith.constant 0 : i32
    %c0_i32_1 = arith.constant 0 : i32
    return %c0_i32, %c0_i32_0 : i32, i32
  }
  func.func @transform_3(%arg0: i32) -> (i32, i32) {
    %c0_i32 = arith.constant 0 : i32
    %c0_i32_0 = arith.constant 0 : i32
    return %arg0, %c0_i32 : i32, i32
  }
}

</mosaic_0001>

<bundles_post_ra>
// kernel: tpu_custom_call.1
= control target key start
LH: loop header
LB: loop body
LE: loop exit
PB: predicated region body
PF: predicated region fallthrough
CT: control target
= control target key end

     0   :  { %8 = vsyncpa [#allocation3], 0  ;;  %s633_s0 = inlined_call_operand.vmem [shape: f32[128,2], index: 0, kind: input, shape index: {}]   ;;  %s634_s1 = inlined_call_operand.vmem [shape: f32[2,128], index: 1, kind: input, shape index: {}]   ;;  %s635_s2 = inlined_call_operand.vmem [shape: f32[1,128], index: 2, kind: input, shape index: {}]   ;;  %s636_s3 = inlined_call_operand.hbm [shape: f32[128,128], index: 3, kind: output, shape index: {}]  }
   0x1   :  { %10 = vsyncpa [#allocation3 + $0x1], 0  ;;  %s528_s12 = smov 0   ;;  %s530_s13 = smov 0  }
   0x2   :  { %s532_s14 = smov 0   ;;  %s534_s15 = smov 0  }
   0x3 LB: > { %s549_s16 = sadd.s32 4294967295, %s502_s15   ;;  %s377_s17 = sadd.s32 4294967294, %s502_s15   ;;  %s502_s15 = sphi %s534_s15, %s642_s15   ;;  %s498_s14 = sphi %s532_s14, %s641_s14   ;;  %s494_s13 = sphi %s530_s13, %s640_s13   ;;  %s490_s12 = sphi %s528_s12, %s639_s12  }
   0x4   : > { %s553_s18 = sadd.s32 1, %s502_s15   ;;  %s91_s19 = sadd.s32 1, %s498_s14 }
   0x5   : > { %s88_s20 = ssub.s32 %s502_s15, %s553_s18  ;;  %p101_p0 = scmp.ne.s32.totalorder %s498_s14, %s494_s13 }
   0x6   : > { %p89_p1 = scmp.eq.s32.totalorder %s88_s20, 0  ;;  %p102_p2 = scmp.eq.s32.totalorder %s549_s16, 1 }
   0x7   : > { %p107_p3 = scmp.ne.s32.totalorder %s494_s13, %s490_s12  ;;  %p108_p4 = scmp.eq.s32.totalorder %s377_s17, 1 }
   0x8   : > { %s564_s21 = scalar_select %p89_p1, %s498_s14, %s91_s19  }
   0x9   : > { %p566_p5 = por %p102_p2, %p101_p0  ;;  %p570_p6 = por %p108_p4, %p107_p3 }
   0xa   : > { %p380_p7 = scmp.ge.s32.totalorder %s502_s15, 1  ;;  %p141_p8 = scmp.lt.s32.totalorder %s502_s15, 3 }
   0xc   : > { %p142_p9 = pnand %p380_p7, %p141_p8 }
   0xd   : > { %s382_s24 = sshll.u32 (!%p142_p9), %s549_s16, 3  ;;  %s162_s4 = sand.u32 (!%p142_p9), 1, %s494_s13  }
   0xe   : > { %145 = sbr.rel (%p142_p9) target bundleno = 187 (0xbb), region = 32  ;;  %p166_p10 = scmp.lt.s32.totalorder (!%p142_p9), %s382_s24, 15 }
   0xf   : > { %s381_s7 = sshll.u32 (!%p142_p9), %s162_s4, 6  ;;  %s389_s9 = sshll.u32 (!%p142_p9), %s549_s16, 6 }
  0x10   : > { %s589_s8 = scalar_lea.vmem (!%p142_p9), [#allocation2], %s381_s7  ;;  %s311_s17 = scalar_lea.hbm (!%p142_p9), %s636_s3, %s389_s9 }
  0x11   : > { %s312_s19 = sshll.u32 (!%p142_p9), %s589_s8, 4  ;;  %s314_s20 = sshll.u32 (!%p142_p9), %s311_s17, 4  ;;  %s313_s19 = int_to_ptr.vmem [resolvable:$true] %s312_s19  ;;  %s315_s20 = int_to_ptr.hbm [resolvable:$true] %s314_s20 }
  0x12   : > { %s300_s16 = scalar_lea.sflag (!%p142_p9), [#allocation3], %s162_s4 }
  0x13   : > { %v504_v0 = vmov 0   ;;  %s644_s24 = smov (!%p166_p10, %s382_s24), 15  ;;  %v505_v9 = vmov 1   ;;  %v180_v13 = vld [vmem:[%s634_s1] sm:$0x3] }
  0x14   : > { %434 = vset.pattern.permute.xlu1 %v504_v0  ;;  %433 = vset.pattern.permute.xlu0 %v504_v0  ;;  %s383_s25 = sshll.u32 %s644_s24, 3  ;;  %v274_v14 = vperm.slane %v180_v13, 1  ;;  %v222_v15 = vperm.slane %v180_v13, 0  ;;  %v439_v18 = vld [vmem:[%s635_s2] ss:$0 sm:$0xff]  ;;  %s454_s24 = sshra.s32 %s315_s20, 4  ;;  %s455_s24 = int_to_ptr.hbm [resolvable:$true] %s454_s24 }
  0x15   : > { %435 = vset.pattern.permute.xlu2 %v504_v0  ;;  %s169_s28 = scalar_lea.vmem %s633_s0, %s383_s25  ;;  %s456_s25 = scalar_lea.hbm %s455_s24, 64 }
  0x16   : > { %v174_v1 = vld [vmem:[%s169_s28 + $0x10] sm:$0xff]  ;;  %v172_v2 = vld [vmem:[%s169_s28] sm:$0xff]  ;;  %v175_v4 = vld [vmem:[%s169_s28 + $0x18] sm:$0xff]  ;;  %p457_p11 = scmp.ne.s32.totalorder %s455_s24, %s456_s25  ;;  %p461_p0 = scmp.lt.s32.totalorder %s455_s24, %s636_s3 }
  0x17   : > { %v176_v3 = vld [vmem:[%s169_s28 + $0x20] sm:$0xff]  ;;  %194 = vperm.xlu1 %434, %v174_v1   ;;  %184 = vperm.xlu0 %433, %v172_v2   ;;  %v173_v5 = vld [vmem:[%s169_s28 + $0x8] sm:$0xff]  ;;  %v179_v7 = vld [vmem:[%s169_s28 + $0x38] sm:$0xff] }
  0x18   : > { %204 = vperm.xlu2 %435, %v176_v3   ;;  %v177_v6 = vld [vmem:[%s169_s28 + $0x28] sm:$0xff]  ;;  %v178_v8 = vld [vmem:[%s169_s28 + $0x30] sm:$0xff]  ;;  %p458_p12 = pnand %p457_p11, %p566_p5  ;;  %s460_s28 = scalar_lea.hbm %s636_s3, 128 }
  0x19   : > { %p462_p1 = scmp.lt.s32.totalorder %s460_s28, %s456_s25 }
  0x1a   : > { %p459_p13 = pneg %p458_p12 }
  0x1b   : > { %p463_p2 = por %p462_p1, %p461_p0 }
  0x1d   : > { %p464_p3 = pnand %p463_p2, %p459_p13 }
  0x1f   : > { %199 = vperm.xlu1 %434, %v175_v4   ;;  %189 = vperm.xlu0 %433, %v173_v5  }
  0x20   : > { %209 = vperm.xlu2 %435, %v177_v6  }
  0x27   : > { %219 = vperm.xlu1 %434, %v179_v7   ;;  %214 = vperm.xlu0 %433, %v178_v8  }
  0x28   : > { %436 = vset.pattern.permute.xlu2 %v505_v9 }
  0x29   : > { %243 = vperm.xlu2 %436, %v172_v2  }
  0x2f   : > { %438 = vset.pattern.permute.xlu1 %v505_v9  ;;  %437 = vset.pattern.permute.xlu0 %v505_v9 }
  0x30   : > { %251 = vperm.xlu1 %438, %v174_v1   ;;  %247 = vperm.xlu0 %437, %v173_v5  }
  0x31   : > { %255 = vperm.xlu2 %436, %v175_v4  }
  0x38   : > { %259 = vperm.xlu1 %438, %v176_v3   ;;  %267 = vperm.xlu0 %437, %v178_v8  }
  0x39   : > { %263 = vperm.xlu2 %436, %v177_v6  }
  0x40   : > { %271 = vperm.xlu1 %438, %v179_v7  }
  0x72   : > { %v205_v10 = vpop.permute.xlu2 %204 }
  0x73   : > { %v227_v47 = vmul.f32 %v222_v15, %v205_v10 }
  0x75   : > { %v238_v51 = vadd.f32 %v439_v18, %v227_v47 }
  0x7a   : > { %v210_v11 = vpop.permute.xlu2 %209 }
  0x7b   : > { %v228_v23 = vmul.f32 %v222_v15, %v210_v11 }
  0x7d   : > { %v239_v27 = vadd.f32 %v439_v18, %v228_v23 }
  0x83   : > { %v244_v12 = vpop.permute.xlu2 %243 }
  0x84   : > { %v275_v19 = vmul.f32 %v274_v14, %v244_v12 }
  0x89   : > { %v195_v16 = vpop.permute.xlu1 %194  ;;  %v185_v17 = vpop.permute.xlu0 %184 }
  0x8a   : > { %v223_v20 = vmul.f32 %v222_v15, %v185_v17  ;;  %v225_v37 = vmul.f32 %v222_v15, %v195_v16 }
  0x8b   : > { %v256_v21 = vpop.permute.xlu2 %255 }
  0x8c   : > { %v234_v22 = vadd.f32 %v439_v18, %v223_v20  ;;  %v278_v28 = vmul.f32 %v274_v14, %v256_v21  ;;  %v236_v41 = vadd.f32 %v439_v18, %v225_v37 }
  0x8e   : > { %v283_v24 = vadd.f32 %v275_v19, %v234_v22 }
  0x90   : > { %291 = vst [vmem:[%s589_s8] sm:$0xff] %v283_v24 }
  0x91   : > { %v200_v25 = vpop.permute.xlu1 %199  ;;  %v190_v26 = vpop.permute.xlu0 %189 }
  0x92   : > { %v226_v29 = vmul.f32 %v222_v15, %v200_v25  ;;  %v224_v38 = vmul.f32 %v222_v15, %v190_v26 }
  0x93   : > { %v264_v30 = vpop.permute.xlu2 %263 }
  0x94   : > { %v237_v31 = vadd.f32 %v439_v18, %v226_v29  ;;  %v280_v32 = vmul.f32 %v274_v14, %v264_v30  ;;  %v235_v42 = vadd.f32 %v439_v18, %v224_v38 }
  0x96   : > { %v286_v33 = vadd.f32 %v278_v28, %v237_v31  ;;  %v288_v34 = vadd.f32 %v280_v32, %v239_v27 }
  0x98   : > { %294 = vst [vmem:[%s589_s8 + $0x18] sm:$0xff] %v286_v33 }
  0x99   : > { %296 = vst [vmem:[%s589_s8 + $0x28] sm:$0xff] %v288_v34  ;;  %v220_v35 = vpop.permute.xlu1 %219  ;;  %v215_v36 = vpop.permute.xlu0 %214 }
  0x9a   : > { %v229_v48 = vmul.f32 %v222_v15, %v215_v36  ;;  %v230_v57 = vmul.f32 %v222_v15, %v220_v35 }
  0x9c   : > { %v240_v52 = vadd.f32 %v439_v18, %v229_v48  ;;  %v241_v59 = vadd.f32 %v439_v18, %v230_v57 }
  0xa2   : > { %v252_v39 = vpop.permute.xlu1 %251  ;;  %v248_v40 = vpop.permute.xlu0 %247 }
  0xa3   : > { %v277_v43 = vmul.f32 %v274_v14, %v252_v39  ;;  %v276_v44 = vmul.f32 %v274_v14, %v248_v40 }
  0xa5   : > { %v285_v45 = vadd.f32 %v277_v43, %v236_v41  ;;  %v284_v46 = vadd.f32 %v276_v44, %v235_v42 }
  0xa7   : > { %293 = vst [vmem:[%s589_s8 + $0x10] sm:$0xff] %v285_v45 }
  0xa8   : > { %292 = vst [vmem:[%s589_s8 + $0x8] sm:$0xff] %v284_v46 }
  0xaa   : > { %v260_v49 = vpop.permute.xlu1 %259  ;;  %v268_v50 = vpop.permute.xlu0 %267 }
  0xab   : > { %v279_v53 = vmul.f32 %v274_v14, %v260_v49  ;;  %v281_v54 = vmul.f32 %v274_v14, %v268_v50 }
  0xad   : > { %v287_v55 = vadd.f32 %v279_v53, %v238_v51  ;;  %v289_v56 = vadd.f32 %v281_v54, %v240_v52 }
  0xaf   : > { %295 = vst [vmem:[%s589_s8 + $0x20] sm:$0xff] %v287_v55 }
  0xb0   : > { %297 = vst [vmem:[%s589_s8 + $0x30] sm:$0xff] %v289_v56 }
  0xb2   : > { %v272_v58 = vpop.permute.xlu1 %271 }
  0xb3   : > { %v282_v60 = vmul.f32 %v274_v14, %v272_v58 }
  0xb5   : > { %v290_v61 = vadd.f32 %v282_v60, %v241_v59 }
  0xb7   : > { %298 = vst [vmem:[%s589_s8 + $0x38] sm:$0xff] %v290_v61 }
  0xb8   : > { %467 = shalt.err (!%p464_p3)
}
  0xb9   : > { %s506_s4 = smov 128   ;;  %s507_s5 = smov 8  }
  0xba   : > { %390 = dma.vmem_to_hbm [thread:$0]  (%p566_p5), %s313_s19, 1024, %s315_s20, %s300_s16, %s506_s4, %s506_s4, %s507_s5  }
  0xbb PF: > { %p396_p4 = scmp.ge.s32.totalorder %s502_s15, 2  ;;  %s329_s6 = sand.u32 1, %s490_s12  }
  0xbc   : > { %s330_s7 = scalar_lea.sflag [#allocation3], %s329_s6 }
  0xbd   : > { %p393_p7 = pnand %p396_p4, %p570_p6 }
  0xbf   : > { %p394_p8 = pneg %p393_p7 }
  0xc1   : > { %485 = dma.done.wait (%p394_p8), %s330_s7, 1024  }
  0xc2   : > { %487 = vsyncadd (%p394_p8), %s330_s7, 4294966272  ;;  %p13_p9 = scmp.ge.s32.totalorder %s553_s18, 4   ;;  %s639_s12 = smov %s494_s13 }
  0xc3   : > { %s640_s13 = smov %s498_s14  ;;  %s641_s14 = smov %s564_s21 }
  0xc4   : > { %s642_s15 = smov %s553_s18  ;;  %15 = sbr.rel (!%p13_p9) target bundleno = 3 (0x3), region = 67 }
  0xc9   :  { %336 = vsyncpa [#allocation3], 1 }
  0xca   :  { %338 = vsyncpa [#allocation3 + $0x1], 1 }

</bundles_post_ra>
